<compile_context>
chip_gen: v7x
topology: tpu7x:2x2x1
jax: 0.10.0
libtpu: 0.0.40
codegen_flags: <defaults>
</compile_context>

<pallas_src>
import numpy as np
import jax
import jax.numpy as jnp
from jax import lax
from jax.experimental import pallas as pl
from jax.experimental.pallas import tpu as pltpu


# ---------------------------------------------------------------------------
# Index generation (host-side, deterministic; mirrors gen_relative_position_index)
# ---------------------------------------------------------------------------
def gen_relative_position_index_np(q_size):
    h, w = q_size
    coords = np.stack(np.meshgrid(np.arange(h), np.arange(w), indexing="ij"))  # (2, h, w)
    coords = coords.reshape(2, -1)                                             # (2, N)
    rel = coords[:, :, None] - coords[:, None, :]                              # (2, N, N)
    rel = rel.transpose(1, 2, 0).reshape(-1, 2)                                # (N*N, 2)
    # torch.unique(dim=0, return_inverse=True) sorts rows lexicographically,
    # identical to np.unique(axis=0).
    _, inv = np.unique(rel, axis=0, return_inverse=True)
    return inv.astype(np.int32)                                                # (N*N,)


def _pad_up(x, m):
    return ((x + m - 1) // m) * m


# ---------------------------------------------------------------------------
# Pallas kernels
# ---------------------------------------------------------------------------
def gather_bias_kernel(idx_ref, table_t_ref, bias_ref):
    """One-shot gather: bias[h, n] = table[idx[n], h] via one-hot MXU matmul.

    idx_ref    : (1, NN)     int32   -- flat relative-position index
    table_t_ref: (H, R_pad)  float32 -- transposed, zero-padded bias table
    bias_ref   : (H, NN)             -- lane-dense bias tile (NN on lanes)
    """
    r_pad = table_t_ref.shape[1]
    nn = idx_ref.shape[1]
    iota_r = lax.broadcasted_iota(jnp.int32, (r_pad, nn), 0)          # (R_pad, NN)
    onehot = (idx_ref[...] == iota_r).astype(jnp.float32)             # (R_pad, NN)
    bias = jnp.dot(table_t_ref[...].astype(jnp.float32), onehot,
                   preferred_element_type=jnp.float32)                # (H, NN)
    bias_ref[...] = bias.astype(bias_ref.dtype)


def add_bias_kernel(bias_ref, attn_ref, out_ref):
    """Hot path: out[b, h, n] = attn[b, h, n] + bias[h, n] (broadcast over batch)."""
    out_ref[...] = attn_ref[...] + bias_ref[...][None]


# ---------------------------------------------------------------------------
# Wrapper
# ---------------------------------------------------------------------------
@jax.jit
def rel_pos_bias_forward(attn_bhnn, bias_table, rel_pos_index):
    """attn_bhnn: (B, H, N, N) -> attn + relative position bias, (B, H, N, N)."""
    B, H, N, _ = attn_bhnn.shape
    NN = N * N
    R = bias_table.shape[0]
    R_pad = _pad_up(R, 128)

    # Tiny (few-KiB) glue only: padded/transposed table and flat index row.
    # No full-tensor transposes of attn.
    table_t = jnp.zeros((H, R_pad), bias_table.dtype).at[:, :R].set(bias_table.T)
    idx_row = rel_pos_index.reshape(1, NN).astype(jnp.int32)

    # Kernel 1: one-shot gather into a lane-dense (H, NN) bias tile.
    bias = pl.pallas_call(
        gather_bias_kernel,
        out_shape=jax.ShapeDtypeStruct((H, NN), attn_bhnn.dtype),
    )(idx_row, table_t)

    # Kernel 2: streaming broadcast add over attn in its native layout.
    attn_3d = attn_bhnn.reshape(B, H, NN)       # free reshape (contiguous collapse)

    # Pick the batch tile adaptively: per-block bytes stay under ~6 MiB so
    # (2 input bufs + 2 output bufs) * block + bias fits comfortably inside
    # a 48 MiB scoped-VMEM limit on every TPU generation (v7x worst case).
    dtype_bytes = jnp.dtype(attn_bhnn.dtype).itemsize
    bytes_per_batch_row = H * NN * dtype_bytes
    block_budget = 6 * 1024 * 1024
    BB = max(1, min(B, block_budget // max(1, bytes_per_batch_row)))
    grid = (pl.cdiv(B, BB),)

    out_3d = pl.pallas_call(
        add_bias_kernel,
        out_shape=jax.ShapeDtypeStruct((B, H, NN), attn_bhnn.dtype),
        grid_spec=pltpu.PrefetchScalarGridSpec(
            num_scalar_prefetch=0,
            grid=grid,
            in_specs=[
                pl.BlockSpec((H, NN), lambda b: (0, 0)),         # bias: VMEM-resident
                pl.BlockSpec((BB, H, NN), lambda b: (b, 0, 0)),  # attn block
            ],
            out_specs=pl.BlockSpec((BB, H, NN), lambda b: (b, 0, 0)),
        ),
        compiler_params=pltpu.CompilerParams(
            dimension_semantics=("parallel",),         # shards across v7x's 2 TCs
            vmem_limit_bytes=48 * 1024 * 1024,         # safe on v7x (64 MiB VMEM)
        ),
        input_output_aliases={1: 0},                   # in-place add over attn
    )(bias, attn_3d)

    return out_3d.reshape(B, H, N, N)                  # free reshape back


# ---------------------------------------------------------------------------
# Pure-JAX reference (PyTorch semantics)
# ---------------------------------------------------------------------------
def rel_pos_bias_reference(attn_bhnn, bias_table, rel_pos_index):
    B, H, N, _ = attn_bhnn.shape
    gathered = bias_table[rel_pos_index]                 # (N*N, H)
    bias = gathered.reshape(N, N, H).transpose(2, 0, 1)  # (H, N, N)
    return attn_bhnn + bias[None]                        # broadcast over batch


# ---------------------------------------------------------------------------
if __name__ == "__main__":
    # Small shapes consistent with the module.
    window_size = (4, 4)
    num_heads = 8
    prefix_tokens = 0
    B = 2

    N = window_size[0] * window_size[1]                   # window_area = 16
    num_relative_distance = (2 * window_size[0] - 1) * (2 * window_size[1] - 1) \
        + 3 * prefix_tokens                               # 49

    key = jax.random.PRNGKey(0)
    k_table, k_attn = jax.random.split(key)

    # trunc_normal_(std=0.02) init for the bias table (deterministic).
    bias_table = 0.02 * jax.random.truncated_normal(
        k_table, -2.0, 2.0, (num_relative_distance, num_heads), dtype=jnp.float32)

    rel_pos_index = jnp.asarray(gen_relative_position_index_np(window_size))  # (N*N,)

    attn = jax.random.normal(k_attn, (B, num_heads, N, N), dtype=jnp.float32)

    out = rel_pos_bias_forward(attn, bias_table, rel_pos_index)
    out = jax.block_until_ready(out)

    ref = rel_pos_bias_reference(attn, bias_table, rel_pos_index)
    assert out.shape == (B, num_heads, N, N)
    np.testing.assert_allclose(np.asarray(out), np.asarray(ref), atol=1e-5, rtol=1e-5)

    print("KERNEL_OK")
</pallas_src>

<mosaic_0001>
module attributes {stable_mosaic.version = 11 : i64} {
  func.func @gather_bias_kernel(%arg0: memref<1x256xi32, #tpu.memory_space<vmem>>, %arg1: memref<8x128xf32, #tpu.memory_space<vmem>>, %arg2: memref<8x256xf32, #tpu.memory_space<vmem>>) attributes {dimension_semantics = [], scalar_prefetch = 0 : i64, scratch_operands = 0 : i64, tpu.core_type = #tpu.core_type<tc>} {
    %0 = tpu.iota {dimensions = array<i32: 0>} : vector<128x256xi32>
    %c0 = arith.constant 0 : index
    %c0_0 = arith.constant 0 : index
    %1 = vector.load %arg0[%c0, %c0_0] : memref<1x256xi32, #tpu.memory_space<vmem>>, vector<1x256xi32>
    %2 = vector.broadcast %1 : vector<1x256xi32> to vector<128x256xi32>
    %3 = arith.cmpi eq, %2, %0 : vector<128x256xi32>
    %4 = arith.extui %3 : vector<128x256xi1> to vector<128x256xi32>
    %5 = arith.sitofp %4 : vector<128x256xi32> to vector<128x256xf32>
    %c0_1 = arith.constant 0 : index
    %c0_2 = arith.constant 0 : index
    %6 = vector.load %arg1[%c0_1, %c0_2] : memref<8x128xf32, #tpu.memory_space<vmem>>, vector<8x128xf32>
    %cst = arith.constant dense<0.000000e+00> : vector<8x256xf32>
    %7 = tpu.matmul %6, %5, %cst {dimension_numbers = #tpu.dot_dimension_numbers<[1], [0], [0], [1], [0, 0, 1, 1], [], []>} : vector<8x128xf32>, vector<128x256xf32>, vector<8x256xf32> -> vector<8x256xf32>
    %c0_3 = arith.constant 0 : index
    %c0_4 = arith.constant 0 : index
    %8 = vector.load %arg2[%c0_3, %c0_4] : memref<8x256xf32, #tpu.memory_space<vmem>>, vector<8x256xf32>
    tpu.vector_store %arg2[%c0_3, %c0_4], %7 {strides = array<i32>} : memref<8x256xf32, #tpu.memory_space<vmem>>, vector<8x256xf32>,
    return
  }
}

module attributes {stable_mosaic.version = 11 : i64} {
  func.func @add_bias_kernel(%arg0: i32, %arg1: memref<8x256xf32, #tpu.memory_space<vmem>>, %arg2: memref<2x8x256xf32, #tpu.memory_space<vmem>>, %arg3: memref<2x8x256xf32, #tpu.memory_space<vmem>>) attributes {dimension_semantics = [#tpu.dimension_semantics<parallel>], iteration_bounds = array<i64: 1>, scalar_prefetch = 0 : i64, scratch_operands = 0 : i64, tpu.core_type = #tpu.core_type<tc>, window_params = [{pipeline_mode = #tpu.pipeline_mode<synchronous>, transform_indices = @transform_0, window_bounds = array<i64: 8, 256>}, {transform_indices = @transform_1, window_bounds = array<i64: 2, 8, 256>}, {transform_indices = @transform_2, window_bounds = array<i64: 2, 8, 256>}]} {
    %c0 = arith.constant 0 : index
    %c0_0 = arith.constant 0 : index
    %c0_1 = arith.constant 0 : index
    %0 = vector.load %arg2[%c0, %c0_0, %c0_1] : memref<2x8x256xf32, #tpu.memory_space<vmem>>, vector<2x8x256xf32>
    %c0_2 = arith.constant 0 : index
    %c0_3 = arith.constant 0 : index
    %1 = vector.load %arg1[%c0_2, %c0_3] : memref<8x256xf32, #tpu.memory_space<vmem>>, vector<8x256xf32>
    %2 = vector.shape_cast %1 : vector<8x256xf32> to vector<1x8x256xf32>
    %3 = vector.broadcast %2 : vector<1x8x256xf32> to vector<2x8x256xf32>
    %4 = arith.addf %0, %3 : vector<2x8x256xf32>
    %c0_4 = arith.constant 0 : index
    %c0_5 = arith.constant 0 : index
    %c0_6 = arith.constant 0 : index
    %5 = vector.load %arg3[%c0_4, %c0_5, %c0_6] : memref<2x8x256xf32, #tpu.memory_space<vmem>>, vector<2x8x256xf32>
    tpu.vector_store %arg3[%c0_4, %c0_5, %c0_6], %4 {strides = array<i32>} : memref<2x8x256xf32, #tpu.memory_space<vmem>>, vector<2x8x256xf32>,
    return
  }
  func.func @transform_0(%arg0: i32) -> (i32, i32) {
    %c0_i32 = arith.constant 0 : i32
    %c0_i32_0 = arith.constant 0 : i32
    %c0_i32_1 = arith.constant 0 : i32
    return %c0_i32, %c0_i32_0 : i32, i32
  }
  func.func @transform_1(%arg0: i32) -> (i32, i32, i32) {
    %c0_i32 = arith.constant 0 : i32
    %c0_i32_0 = arith.constant 0 : i32
    %c0_i32_1 = arith.constant 0 : i32
    return %arg0, %c0_i32, %c0_i32_0 : i32, i32, i32
  }
  func.func @transform_2(%arg0: i32) -> (i32, i32, i32) {
    %c0_i32 = arith.constant 0 : i32
    %c0_i32_0 = arith.constant 0 : i32
    %c0_i32_1 = arith.constant 0 : i32
    return %arg0, %c0_i32, %c0_i32_0 : i32, i32, i32
  }
}

</mosaic_0001>

<bundles_post_ra>
// kernel: rel_pos_bias_forward.2
= control target key start
LH: loop header
LB: loop body
LE: loop exit
PB: predicated region body
PF: predicated region fallthrough
CT: control target
= control target key end

     0   :  { %v11_v0 = vlaneseq  ;;  %v309_v1 = vmov 0.0   ;;  %v310_v13 = vmov 1.0|1.0   ;;  %s411_s0 = inlined_call_operand.vmem [shape: s32[1,256], index: 0, kind: input, shape index: {}]   ;;  %s412_s1 = inlined_call_operand.vmem [shape: f32[8,128], index: 1, kind: input, shape index: {}]   ;;  %s413_s2 = inlined_call_operand.vmem [shape: f32[8,256], index: 2, kind: output, shape index: {}]  }
   0x1   :  { %198 = vmatprep.mubr.f32.mxu0 %v309_v1  ;;  %v28_v3 = vld [vmem:[%s411_s0] sm:$0x3] }
   0x2   :  { %v326_v2 = vshrl.u32 %v11_v0, 7  ;;  %v133_v24 = vld [vmem:[%s412_s1] sm:$0xff] }
   0x4   :  { %v13_v4 = vadd.s32 8, %v326_v2  ;;  %v35_v5 = vsub.s32 1, %v326_v2  ;;  %v31_v6 = vsub.s32 0, %v326_v2  ;;  %v14_v7 = vadd.s32 16, %v326_v2 }
   0x5   :  { %v15_v8 = vadd.s32 24, %v326_v2  ;;  %v16_v11 = vadd.s32 32, %v326_v2  ;;  %v17_v12 = vadd.s32 40, %v326_v2  ;;  %v18_v14 = vadd.s32 48, %v326_v2 }
   0x6   :  { %v336_v9 = vrot.slane %v28_v3, %v35_v5  ;;  %v338_v10 = vrot.slane %v28_v3, %v31_v6  ;;  %v19_v15 = vadd.s32 56, %v326_v2  ;;  %v20_v16 = vadd.s32 64, %v326_v2 }
   0x7   :  { %v21_v17 = vadd.s32 72, %v326_v2  ;;  %v22_v18 = vadd.s32 80, %v326_v2  ;;  %v23_v19 = vadd.s32 88, %v326_v2  ;;  %v24_v20 = vadd.s32 96, %v326_v2 }
   0x8   :  { %vm38_vm0 = vcmp.eq.s32.totalorder %v336_v9, %v326_v2  ;;  %vm40_vm1 = vcmp.eq.s32.totalorder %v336_v9, %v13_v4  ;;  %vm37_vm2 = vcmp.eq.s32.totalorder %v338_v10, %v326_v2  ;;  %vm39_vm3 = vcmp.eq.s32.totalorder %v338_v10, %v13_v4 }
   0x9   :  { %vm275_vm4 = vmpackc.low %vm40_vm1, %vm38_vm0  ;;  %vm42_vm5 = vcmp.eq.s32.totalorder %v336_v9, %v14_v7  ;;  %vm44_vm6 = vcmp.eq.s32.totalorder %v336_v9, %v15_v8  ;;  %vm41_vm7 = vcmp.eq.s32.totalorder %v338_v10, %v14_v7  ;;  %vm43_vm8 = vcmp.eq.s32.totalorder %v338_v10, %v15_v8 }
   0xa   :  { %276 = vmatprep.subr.msk.bf16.mxu0 %vm275_vm4, %v310_v13  ;;  %vm277_vm9 = vmpackc.low %vm39_vm3, %vm37_vm2  ;;  %vm46_vm10 = vcmp.eq.s32.totalorder %v336_v9, %v16_v11  ;;  %vm48_vm11 = vcmp.eq.s32.totalorder %v336_v9, %v17_v12  ;;  %vm45_vm15 = vcmp.eq.s32.totalorder %v338_v10, %v16_v11  ;;  %vm47_vm0 = vcmp.eq.s32.totalorder %v338_v10, %v17_v12 }
   0xb   :  { %278 = vmatpush1.bf16.msk.msra.mxu0 %vm277_vm9, %v310_v13  ;;  %vm279_vm12 = vmpackc.low %vm44_vm6, %vm42_vm5  ;;  %vm50_vm1 = vcmp.eq.s32.totalorder %v336_v9, %v18_v14  ;;  %vm52_vm2 = vcmp.eq.s32.totalorder %v336_v9, %v19_v15  ;;  %vm49_vm5 = vcmp.eq.s32.totalorder %v338_v10, %v18_v14  ;;  %vm51_vm6 = vcmp.eq.s32.totalorder %v338_v10, %v19_v15 }
   0xc   :  { %280 = vmatprep.subr.msk.bf16.mxu0 %vm279_vm12, %v310_v13  ;;  %vm281_vm13 = vmpackc.low %vm43_vm8, %vm41_vm7  ;;  %vm54_vm7 = vcmp.eq.s32.totalorder %v336_v9, %v20_v16  ;;  %vm56_vm8 = vcmp.eq.s32.totalorder %v336_v9, %v21_v17  ;;  %vm55_vm12 = vcmp.eq.s32.totalorder %v338_v10, %v21_v17  ;;  %v25_v21 = vadd.s32 104, %v326_v2 }
   0xd   :  { %vm283_vm14 = vmpackc.low %vm48_vm11, %vm46_vm10  ;;  %vm53_vm11 = vcmp.eq.s32.totalorder %v338_v10, %v20_v16  ;;  %v26_v22 = vadd.s32 112, %v326_v2  ;;  %v27_v23 = vadd.s32 120, %v326_v2 }
   0xe   :  { %vm285_vm3 = vmpackc.low %vm47_vm0, %vm45_vm15 }
   0xf   :  { %282 = vmatpush1.bf16.msk.msra.mxu0 %vm281_vm13, %v310_v13  ;;  %vm287_vm4 = vmpackc.low %vm52_vm2, %vm50_vm1  ;;  %vm58_vm13 = vcmp.eq.s32.totalorder %v336_v9, %v22_v18  ;;  %vm57_vm1 = vcmp.eq.s32.totalorder %v338_v10, %v22_v18  ;;  %vm59_vm2 = vcmp.eq.s32.totalorder %v338_v10, %v23_v19 }
  0x10   :  { %284 = vmatprep.subr.msk.bf16.mxu0 %vm283_vm14, %v310_v13  ;;  %vm289_vm9 = vmpackc.low %vm51_vm6, %vm49_vm5  ;;  %vm60_vm14 = vcmp.eq.s32.totalorder %v336_v9, %v23_v19 }
  0x11   :  { %vm291_vm10 = vmpackc.low %vm56_vm8, %vm54_vm7  ;;  %vm61_vm7 = vcmp.eq.s32.totalorder %v338_v10, %v24_v20  ;;  %vm63_vm8 = vcmp.eq.s32.totalorder %v338_v10, %v25_v21 }
  0x12   :  { %vm293_vm15 = vmpackc.low %vm55_vm12, %vm53_vm11 }
  0x13   :  { %286 = vmatpush1.bf16.msk.msra.mxu0 %vm285_vm3, %v310_v13  ;;  %vm295_vm0 = vmpackc.low %vm60_vm14, %vm58_vm13  ;;  %vm62_vm3 = vcmp.eq.s32.totalorder %v336_v9, %v24_v20  ;;  %vm65_vm13 = vcmp.eq.s32.totalorder %v338_v10, %v26_v22  ;;  %vm67_vm14 = vcmp.eq.s32.totalorder %v338_v10, %v27_v23 }
  0x14   :  { %288 = vmatprep.subr.msk.bf16.mxu0 %vm287_vm4, %v310_v13  ;;  %vm64_vm4 = vcmp.eq.s32.totalorder %v336_v9, %v25_v21  ;;  %vm297_vm5 = vmpackc.low %vm59_vm2, %vm57_vm1 }
  0x15   :  { %vm299_vm6 = vmpackc.low %vm64_vm4, %vm62_vm3 }
  0x16   :  { %vm301_vm11 = vmpackc.low %vm63_vm8, %vm61_vm7 }
  0x17   :  { %290 = vmatpush1.bf16.msk.msra.mxu0 %vm289_vm9, %v310_v13  ;;  %vm66_vm9 = vcmp.eq.s32.totalorder %v336_v9, %v26_v22 }
  0x18   :  { %292 = vmatprep.subr.msk.bf16.mxu0 %vm291_vm10, %v310_v13  ;;  %vm68_vm10 = vcmp.eq.s32.totalorder %v336_v9, %v27_v23 }
  0x19   :  { %vm303_vm12 = vmpackc.low %vm68_vm10, %vm66_vm9 }
  0x1b   :  { %294 = vmatpush1.bf16.msk.msra.mxu0 %vm293_vm15, %v310_v13  ;;  %vm305_vm15 = vmpackc.low %vm67_vm14, %vm65_vm13 }
  0x1c   :  { %296 = vmatprep.subr.msk.bf16.mxu0 %vm295_vm0, %v310_v13 }
  0x1f   :  { %298 = vmatpush1.bf16.msk.msra.mxu0 %vm297_vm5, %v310_v13 }
  0x20   :  { %300 = vmatprep.subr.msk.bf16.mxu0 %vm299_vm6, %v310_v13 }
  0x23   :  { %302 = vmatpush1.bf16.msk.msra.mxu0 %vm301_vm11, %v310_v13 }
  0x24   :  { %304 = vmatprep.subr.msk.bf16.mxu0 %vm303_vm12, %v310_v13 }
  0x27   :  { %306 = vmatpush1.bf16.msk.msra.mxu0 %vm305_vm15, %v310_v13 }
  0x2a   :  { %199 = vmatmul.mubr.f32.vlgmr.msra.gmra.mrb[0].mxu0 %v133_v24 }
  0xfd   :  { %v200_v25 = vpop.f32.mrb[0].mxu0 }
  0xfe   :  { %205 = vst [vmem:[%s413_s2] sm:$0xff] %v200_v25  ;;  %v202_v26 = vpop.f32.mrb[1].mxu0 }
  0xff   :  { %206 = vst [vmem:[%s413_s2 + $0x8] sm:$0xff] %v202_v26 }

// kernel: rel_pos_bias_forward.3
= control target key start
LH: loop header
LB: loop body
LE: loop exit
PB: predicated region body
PF: predicated region fallthrough
CT: control target
= control target key end

     0   :  { %s74_s0 = inlined_call_operand.vmem [shape: f32[8,256], index: 0, kind: input, shape index: {}]   ;;  %s75_s1 = inlined_call_operand.vmem [shape: f32[2,8,256], index: 1, kind: input, shape index: {}, may-alias: {1,2}]   ;;  %s76_s2 = inlined_call_operand.vmem [shape: f32[2,8,256], index: 2, kind: output, shape index: {}, may-alias: {1,2}]  }
   0x1   :  { %v11_v0 = vld [vmem:[%s75_s1] sm:$0xff]  ;;  %v12_v2 = vld [vmem:[%s75_s1 + $0x8] sm:$0xff]  ;;  %v13_v5 = vld [vmem:[%s75_s1 + $0x10] sm:$0xff] }
   0x2   :  { %v15_v1 = vld [vmem:[%s74_s0] sm:$0xff]  ;;  %v16_v4 = vld [vmem:[%s74_s0 + $0x8] sm:$0xff]  ;;  %v14_v6 = vld [vmem:[%s75_s1 + $0x18] sm:$0xff] }
   0x3   :  { %v17_v3 = vadd.f32 %v15_v1, %v11_v0  ;;  %v18_v7 = vadd.f32 %v16_v4, %v12_v2  ;;  %v19_v8 = vadd.f32 %v15_v1, %v13_v5  ;;  %v20_v9 = vadd.f32 %v16_v4, %v14_v6 }
   0x5   :  { %21 = vst [vmem:[%s76_s2] sm:$0xff] %v17_v3  ;;  %22 = vst [vmem:[%s76_s2 + $0x8] sm:$0xff] %v18_v7 }
   0x6   :  { %23 = vst [vmem:[%s76_s2 + $0x10] sm:$0xff] %v19_v8  ;;  %24 = vst [vmem:[%s76_s2 + $0x18] sm:$0xff] %v20_v9 }

</bundles_post_ra>
